<compile_context>
chip_gen: v7x
topology: tpu7x:2x2x1
jax: 0.10.0
libtpu: 0.0.40
codegen_flags: <defaults>
</compile_context>

<pallas_src>
import functools

import jax
import jax.numpy as jnp
from jax import lax
from jax.experimental import pallas as pl
from jax.experimental.pallas import tpu as pltpu


def _choose_bt(B, per_b_bytes, target=2 << 20, cap=4 << 20):
    """Batch elements per grid step: smallest divisor of B reaching ~target bytes."""
    bt = 1
    for cand in range(1, B + 1):
        if B % cand:
            continue
        if cand * per_b_bytes > cap:
            break
        bt = cand
        if cand * per_b_bytes >= target:
            break
    return bt


def _choose_cc(C, HW):
    """C-chunk size for the streamed reduce/gate (keeps live chunks to a few vregs)."""
    cap = max(1, min(8, 16384 // max(HW, 1)))
    for cc in range(min(C, cap), 0, -1):
        if C % cc == 0:
            return cc
    return 1


def _spatial_attention_kernel(w_ref, x_ref, o_ref, *, Bt, C, Cc, H, W, K):
    # w_ref: SMEM (2*K*K,) f32 -- flattened PyTorch OIHW conv weight (O=1, I=2).
    # x_ref: VMEM (Bt, C, H*W) -- lane-dense view of Bt batch elements.
    # o_ref: VMEM (Bt, C, H*W)
    HW = H * W
    pad = (K - 1) // 2
    n_chunks = C // Cc
    SUB = 8  # sublane replication for the conv planes (native (8,128) tiling)

    # Conv weights as scalars, hoisted out of every loop (2*K*K SMEM reads).
    wvals = [w_ref[t] for t in range(2 * K * K)]

    # Flat lane index and column index (idx % W via restoring division -- no
    # vector integer div/mod needed).  Row-uniform across the 8 sublanes.
    idx = lax.broadcasted_iota(jnp.int32, (SUB, HW), 1)
    col = idx
    for kk in range(max(0, (H - 1).bit_length()) - 1, -1, -1):
        step = W << kk
        col = jnp.where(col >= step, col - step, col)

    # Per-tap (lane shift, boundary mask) precomputed ONCE -- shared across the
    # unrolled batch loop and across the avg/max planes of each tap.
    taps = []
    for ky in range(K):
        dy = ky - pad
        for kx in range(K):
            dx = kx - pad
            s = dy * W + dx
            conds = []
            if dy > 0:
                conds.append(idx < HW - dy * W)
            elif dy < 0:
                conds.append(idx >= -dy * W)
            if dx > 0:
                conds.append(col < W - dx)
            elif dx < 0:
                conds.append(col >= -dx)
            valid = None
            for cnd in conds:
                valid = cnd if valid is None else valid & cnd
            taps.append((ky * K + kx, s, valid))

    for b in range(Bt):
        # ---- channel sum / max, streamed over C chunks (bounded live range) ----
        def reduce_body(ci, carry):
            s_acc, m_acc = carry
            xc = x_ref[b, pl.ds(ci * Cc, Cc), :].astype(jnp.float32)
            return s_acc + xc, jnp.maximum(m_acc, xc)

        init = (jnp.zeros((Cc, HW), jnp.float32),
                jnp.full((Cc, HW), -jnp.inf, jnp.float32))
        if n_chunks > 1:
            s_acc, m_acc = lax.fori_loop(0, n_chunks, reduce_body, init,
                                         unroll=n_chunks <= 8)
        else:
            s_acc, m_acc = reduce_body(0, init)

        avg = jnp.sum(s_acc, axis=0, keepdims=True) * (1.0 / C)   # (1, HW)
        mx = jnp.max(m_acc, axis=0, keepdims=True)                # (1, HW)
        avg_p = jnp.broadcast_to(avg, (SUB, HW))
        mx_p = jnp.broadcast_to(mx, (SUB, HW))

        # ---- 2-in / 1-out KxK "SAME" conv on the flattened planes ----
        # Tap (dy, dx) of the 2D conv == lane shift by s = dy*W + dx of the flat
        # plane (pltpu.roll on the XLU) with the cyclic wrap masked off (VPU).
        # The avg/max taps share the same shift + mask, so one select per tap.
        acc = jnp.zeros((SUB, HW), jnp.float32)
        for tap_idx, s, valid in taps:
            w_avg = wvals[tap_idx]            # input channel 0 = avg plane
            w_max = wvals[K * K + tap_idx]    # input channel 1 = max plane
            ta, tm = avg_p, mx_p
            if s != 0:
                shift = (-s) % HW
                ta = pltpu.roll(ta, shift=shift, axis=1)
                tm = pltpu.roll(tm, shift=shift, axis=1)
            contrib = w_avg * ta + w_max * tm
            if valid is not None:
                contrib = jnp.where(valid, contrib, 0.0)
            acc = acc + contrib

        # Sigmoid on a single sublane row (8x less EUP work), then sublane
        # broadcast once -- hoisted out of the gating loop.
        scale_row = jax.nn.sigmoid(acc[:1, :])                     # (1, HW) f32
        scale_c = jnp.broadcast_to(scale_row, (Cc, HW))

        # ---- gate x chunk-by-chunk; full-width lane-dense stores ----
        def gate_body(ci, carry=0):
            xc = x_ref[b, pl.ds(ci * Cc, Cc), :].astype(jnp.float32)
            o_ref[b, pl.ds(ci * Cc, Cc), :] = (xc * scale_c).astype(o_ref.dtype)
            return carry

        if n_chunks > 1:
            lax.fori_loop(0, n_chunks, gate_body, 0, unroll=n_chunks <= 8)
        else:
            gate_body(0)


def spatial_attention(x, conv_w, *, kernel_size=3):
    """x: (B, C, H, W); conv_w: (1, 2, K, K) (PyTorch Conv2d weight, no bias)."""
    B, C, H, W = x.shape
    K = kernel_size
    assert conv_w.shape == (1, 2, K, K)
    HW = H * W

    x_flat = x.reshape(B, C, HW)                # free at XLA level; lane-dense last dim
    w_flat = conv_w.reshape(-1).astype(jnp.float32)

    per_b_bytes = C * HW * x.dtype.itemsize
    Bt = _choose_bt(B, per_b_bytes)
    Cc = _choose_cc(C, HW)

    kernel = functools.partial(_spatial_attention_kernel,
                               Bt=Bt, C=C, Cc=Cc, H=H, W=W, K=K)

    # TODO(synk): on v7x (2 TensorCores) with B // Bt == 1, a two-pass C-tiled
    # grid (reduce+conv pass, then a parallel C-tiled gating pass) would use
    # both cores; the single-pass per-batch grid keeps this kernel simple.
    out_flat = pl.pallas_call(
        kernel,
        out_shape=jax.ShapeDtypeStruct((B, C, HW), x.dtype),
        grid_spec=pltpu.PrefetchScalarGridSpec(
            num_scalar_prefetch=0,
            grid=(B // Bt,),
            in_specs=[
                pl.BlockSpec(memory_space=pltpu.MemorySpace.SMEM),   # conv weight
                pl.BlockSpec((Bt, C, HW), lambda i: (i, 0, 0)),      # x block
            ],
            out_specs=pl.BlockSpec((Bt, C, HW), lambda i: (i, 0, 0)),
        ),
        compiler_params=pltpu.CompilerParams(
            dimension_semantics=("parallel",),
            vmem_limit_bytes=32 * 1024 * 1024,
        ),
    )(w_flat, x_flat)

    return out_flat.reshape(B, C, H, W)


def spatial_attention_ref(x, conv_w):
    """Pure-JAX reference identical to the PyTorch forward."""
    avg = jnp.mean(x, axis=1, keepdims=True)
    mx = jnp.max(x, axis=1, keepdims=True)
    s = jnp.concatenate([avg, mx], axis=1)
    s = lax.conv_general_dilated(
        s, conv_w, window_strides=(1, 1), padding="SAME",
        dimension_numbers=("NCHW", "OIHW", "NCHW"),
    )
    return x * jax.nn.sigmoid(s)


if __name__ == "__main__":
    key = jax.random.PRNGKey(0)
    kx, kw = jax.random.split(key)

    B, C, H, W = 2, 4, 16, 16
    K = 3
    x = jax.random.normal(kx, (B, C, H, W), dtype=jnp.float32)

    # Deterministic conv weight init (PyTorch default kaiming-uniform bound).
    fan_in = 2 * K * K
    bound = 1.0 / (fan_in ** 0.5)
    conv_w = jax.random.uniform(kw, (1, 2, K, K), jnp.float32, -bound, bound)

    out = spatial_attention(x, conv_w, kernel_size=K)
    out = jax.block_until_ready(out)

    ref = spatial_attention_ref(x, conv_w)
    assert out.shape == x.shape and out.dtype == x.dtype
    assert jnp.allclose(out, ref, atol=1e-5, rtol=1e-5), "mismatch vs JAX reference"

    print("KERNEL_OK")
</pallas_src>

<mosaic_0001>
module attributes {stable_mosaic.version = 11 : i64} {
  func.func @_spatial_attention_kernel(%arg0: i32, %arg1: memref<18xf32, #tpu.memory_space<smem>>, %arg2: memref<2x4x256xf32, #tpu.memory_space<vmem>>, %arg3: memref<2x4x256xf32, #tpu.memory_space<vmem>>) attributes {dimension_semantics = [#tpu.dimension_semantics<parallel>], iteration_bounds = array<i64: 1>, scalar_prefetch = 0 : i64, scratch_operands = 0 : i64, tpu.core_type = #tpu.core_type<tc>, window_params = [{transform_indices = @transform_0, window_bounds = array<i64: 18>}, {transform_indices = @transform_1, window_bounds = array<i64: 2, 4, 256>}, {transform_indices = @transform_2, window_bounds = array<i64: 2, 4, 256>}]} {
    %c0 = arith.constant 0 : index
    %0 = memref.load %arg1[%c0] : memref<18xf32, #tpu.memory_space<smem>>
    %c1 = arith.constant 1 : index
    %1 = memref.load %arg1[%c1] : memref<18xf32, #tpu.memory_space<smem>>
    %c2 = arith.constant 2 : index
    %2 = memref.load %arg1[%c2] : memref<18xf32, #tpu.memory_space<smem>>
    %c3 = arith.constant 3 : index
    %3 = memref.load %arg1[%c3] : memref<18xf32, #tpu.memory_space<smem>>
    %c4 = arith.constant 4 : index
    %4 = memref.load %arg1[%c4] : memref<18xf32, #tpu.memory_space<smem>>
    %c5 = arith.constant 5 : index
    %5 = memref.load %arg1[%c5] : memref<18xf32, #tpu.memory_space<smem>>
    %c6 = arith.constant 6 : index
    %6 = memref.load %arg1[%c6] : memref<18xf32, #tpu.memory_space<smem>>
    %c7 = arith.constant 7 : index
    %7 = memref.load %arg1[%c7] : memref<18xf32, #tpu.memory_space<smem>>
    %c8 = arith.constant 8 : index
    %8 = memref.load %arg1[%c8] : memref<18xf32, #tpu.memory_space<smem>>
    %c9 = arith.constant 9 : index
    %9 = memref.load %arg1[%c9] : memref<18xf32, #tpu.memory_space<smem>>
    %c10 = arith.constant 10 : index
    %10 = memref.load %arg1[%c10] : memref<18xf32, #tpu.memory_space<smem>>
    %c11 = arith.constant 11 : index
    %11 = memref.load %arg1[%c11] : memref<18xf32, #tpu.memory_space<smem>>
    %c12 = arith.constant 12 : index
    %12 = memref.load %arg1[%c12] : memref<18xf32, #tpu.memory_space<smem>>
    %c13 = arith.constant 13 : index
    %13 = memref.load %arg1[%c13] : memref<18xf32, #tpu.memory_space<smem>>
    %c14 = arith.constant 14 : index
    %14 = memref.load %arg1[%c14] : memref<18xf32, #tpu.memory_space<smem>>
    %c15 = arith.constant 15 : index
    %15 = memref.load %arg1[%c15] : memref<18xf32, #tpu.memory_space<smem>>
    %c16 = arith.constant 16 : index
    %16 = memref.load %arg1[%c16] : memref<18xf32, #tpu.memory_space<smem>>
    %c17 = arith.constant 17 : index
    %17 = memref.load %arg1[%c17] : memref<18xf32, #tpu.memory_space<smem>>
    %18 = tpu.iota {dimensions = array<i32: 1>} : vector<8x256xi32>
    %c128_i32 = arith.constant 128 : i32
    %19 = vector.broadcast %c128_i32 : i32 to vector<8x256xi32>
    %20 = arith.cmpi sge, %18, %19 : vector<8x256xi32>
    %c128_i32_0 = arith.constant 128 : i32
    %21 = vector.broadcast %c128_i32_0 : i32 to vector<8x256xi32>
    %22 = arith.subi %18, %21 : vector<8x256xi32>
    %23 = arith.select %20, %22, %18 : vector<8x256xi1>, vector<8x256xi32>
    %c64_i32 = arith.constant 64 : i32
    %24 = vector.broadcast %c64_i32 : i32 to vector<8x256xi32>
    %25 = arith.cmpi sge, %23, %24 : vector<8x256xi32>
    %c64_i32_1 = arith.constant 64 : i32
    %26 = vector.broadcast %c64_i32_1 : i32 to vector<8x256xi32>
    %27 = arith.subi %23, %26 : vector<8x256xi32>
    %28 = arith.select %25, %27, %23 : vector<8x256xi1>, vector<8x256xi32>
    %c32_i32 = arith.constant 32 : i32
    %29 = vector.broadcast %c32_i32 : i32 to vector<8x256xi32>
    %30 = arith.cmpi sge, %28, %29 : vector<8x256xi32>
    %c32_i32_2 = arith.constant 32 : i32
    %31 = vector.broadcast %c32_i32_2 : i32 to vector<8x256xi32>
    %32 = arith.subi %28, %31 : vector<8x256xi32>
    %33 = arith.select %30, %32, %28 : vector<8x256xi1>, vector<8x256xi32>
    %c16_i32 = arith.constant 16 : i32
    %34 = vector.broadcast %c16_i32 : i32 to vector<8x256xi32>
    %35 = arith.cmpi sge, %33, %34 : vector<8x256xi32>
    %c16_i32_3 = arith.constant 16 : i32
    %36 = vector.broadcast %c16_i32_3 : i32 to vector<8x256xi32>
    %37 = arith.subi %33, %36 : vector<8x256xi32>
    %38 = arith.select %35, %37, %33 : vector<8x256xi1>, vector<8x256xi32>
    %c16_i32_4 = arith.constant 16 : i32
    %39 = vector.broadcast %c16_i32_4 : i32 to vector<8x256xi32>
    %40 = arith.cmpi sge, %18, %39 : vector<8x256xi32>
    %c1_i32 = arith.constant 1 : i32
    %41 = vector.broadcast %c1_i32 : i32 to vector<8x256xi32>
    %42 = arith.cmpi sge, %38, %41 : vector<8x256xi32>
    %43 = arith.andi %40, %42 : vector<8x256xi1>
    %c16_i32_5 = arith.constant 16 : i32
    %44 = vector.broadcast %c16_i32_5 : i32 to vector<8x256xi32>
    %45 = arith.cmpi sge, %18, %44 : vector<8x256xi32>
    %c16_i32_6 = arith.constant 16 : i32
    %46 = vector.broadcast %c16_i32_6 : i32 to vector<8x256xi32>
    %47 = arith.cmpi sge, %18, %46 : vector<8x256xi32>
    %c15_i32 = arith.constant 15 : i32
    %48 = vector.broadcast %c15_i32 : i32 to vector<8x256xi32>
    %49 = arith.cmpi slt, %38, %48 : vector<8x256xi32>
    %50 = arith.andi %47, %49 : vector<8x256xi1>
    %c1_i32_7 = arith.constant 1 : i32
    %51 = vector.broadcast %c1_i32_7 : i32 to vector<8x256xi32>
    %52 = arith.cmpi sge, %38, %51 : vector<8x256xi32>
    %c15_i32_8 = arith.constant 15 : i32
    %53 = vector.broadcast %c15_i32_8 : i32 to vector<8x256xi32>
    %54 = arith.cmpi slt, %38, %53 : vector<8x256xi32>
    %c240_i32 = arith.constant 240 : i32
    %55 = vector.broadcast %c240_i32 : i32 to vector<8x256xi32>
    %56 = arith.cmpi slt, %18, %55 : vector<8x256xi32>
    %c1_i32_9 = arith.constant 1 : i32
    %57 = vector.broadcast %c1_i32_9 : i32 to vector<8x256xi32>
    %58 = arith.cmpi sge, %38, %57 : vector<8x256xi32>
    %59 = arith.andi %56, %58 : vector<8x256xi1>
    %c240_i32_10 = arith.constant 240 : i32
    %60 = vector.broadcast %c240_i32_10 : i32 to vector<8x256xi32>
    %61 = arith.cmpi slt, %18, %60 : vector<8x256xi32>
    %c240_i32_11 = arith.constant 240 : i32
    %62 = vector.broadcast %c240_i32_11 : i32 to vector<8x256xi32>
    %63 = arith.cmpi slt, %18, %62 : vector<8x256xi32>
    %c15_i32_12 = arith.constant 15 : i32
    %64 = vector.broadcast %c15_i32_12 : i32 to vector<8x256xi32>
    %65 = arith.cmpi slt, %38, %64 : vector<8x256xi32>
    %66 = arith.andi %63, %65 : vector<8x256xi1>
    %cst = arith.constant 0.000000e+00 : f32
    %67 = vector.broadcast %cst : f32 to vector<4x256xf32>
    %cst_13 = arith.constant 0xFF800000 : f32
    %68 = vector.broadcast %cst_13 : f32 to vector<4x256xf32>
    %c0_14 = arith.constant 0 : index
    %c0_15 = arith.constant 0 : index
    %c0_16 = arith.constant 0 : index
    %69 = vector.load %arg2[%c0_14, %c0_15, %c0_16] : memref<2x4x256xf32, #tpu.memory_space<vmem>>, vector<1x4x256xf32>
    %70 = vector.shape_cast %69 : vector<1x4x256xf32> to vector<4x256xf32>
    %71 = arith.addf %67, %70 : vector<4x256xf32>
    %72 = arith.maximumf %68, %70 : vector<4x256xf32>
    %cst_17 = arith.constant dense<0.000000e+00> : vector<256xf32>
    %73 = vector.multi_reduction <add>, %71, %cst_17 [0] : vector<4x256xf32> to vector<256xf32>
    %74 = vector.shape_cast %73 : vector<256xf32> to vector<1x256xf32>
    %cst_18 = arith.constant 2.500000e-01 : f32
    %75 = vector.broadcast %cst_18 : f32 to vector<1x256xf32>
    %76 = arith.mulf %74, %75 : vector<1x256xf32>
    %cst_19 = arith.constant dense<0xFF800000> : vector<256xf32>
    %77 = vector.multi_reduction <maximumf>, %72, %cst_19 [0] : vector<4x256xf32> to vector<256xf32>
    %78 = vector.shape_cast %77 : vector<256xf32> to vector<1x256xf32>
    %79 = vector.shape_cast %76 : vector<1x256xf32> to vector<1x256xf32>
    %80 = vector.broadcast %79 : vector<1x256xf32> to vector<8x256xf32>
    %81 = vector.shape_cast %78 : vector<1x256xf32> to vector<1x256xf32>
    %82 = vector.broadcast %81 : vector<1x256xf32> to vector<8x256xf32>
    %cst_20 = arith.constant 0.000000e+00 : f32
    %83 = vector.broadcast %cst_20 : f32 to vector<8x256xf32>
    %c17_i32 = arith.constant 17 : i32
    %84 = tpu.dynamic_rotate %80 by %c17_i32 dim 1 : vector<8x256xf32>, i32 -> vector<8x256xf32>
    %c17_i32_21 = arith.constant 17 : i32
    %85 = tpu.dynamic_rotate %82 by %c17_i32_21 dim 1 : vector<8x256xf32>, i32 -> vector<8x256xf32>
    %86 = vector.broadcast %0 : f32 to vector<8x256xf32>
    %87 = arith.mulf %86, %84 : vector<8x256xf32>
    %88 = vector.broadcast %9 : f32 to vector<8x256xf32>
    %89 = arith.mulf %88, %85 : vector<8x256xf32>
    %90 = arith.addf %87, %89 : vector<8x256xf32>
    %cst_22 = arith.constant 0.000000e+00 : f32
    %91 = vector.broadcast %cst_22 : f32 to vector<8x256xf32>
    %92 = arith.select %43, %90, %91 : vector<8x256xi1>, vector<8x256xf32>
    %93 = arith.addf %83, %92 : vector<8x256xf32>
    %c16_i32_23 = arith.constant 16 : i32
    %94 = tpu.dynamic_rotate %80 by %c16_i32_23 dim 1 : vector<8x256xf32>, i32 -> vector<8x256xf32>
    %c16_i32_24 = arith.constant 16 : i32
    %95 = tpu.dynamic_rotate %82 by %c16_i32_24 dim 1 : vector<8x256xf32>, i32 -> vector<8x256xf32>
    %96 = vector.broadcast %1 : f32 to vector<8x256xf32>
    %97 = arith.mulf %96, %94 : vector<8x256xf32>
    %98 = vector.broadcast %10 : f32 to vector<8x256xf32>
    %99 = arith.mulf %98, %95 : vector<8x256xf32>
    %100 = arith.addf %97, %99 : vector<8x256xf32>
    %cst_25 = arith.constant 0.000000e+00 : f32
    %101 = vector.broadcast %cst_25 : f32 to vector<8x256xf32>
    %102 = arith.select %45, %100, %101 : vector<8x256xi1>, vector<8x256xf32>
    %103 = arith.addf %93, %102 : vector<8x256xf32>
    %c15_i32_26 = arith.constant 15 : i32
    %104 = tpu.dynamic_rotate %80 by %c15_i32_26 dim 1 : vector<8x256xf32>, i32 -> vector<8x256xf32>
    %c15_i32_27 = arith.constant 15 : i32
    %105 = tpu.dynamic_rotate %82 by %c15_i32_27 dim 1 : vector<8x256xf32>, i32 -> vector<8x256xf32>
    %106 = vector.broadcast %2 : f32 to vector<8x256xf32>
    %107 = arith.mulf %106, %104 : vector<8x256xf32>
    %108 = vector.broadcast %11 : f32 to vector<8x256xf32>
    %109 = arith.mulf %108, %105 : vector<8x256xf32>
    %110 = arith.addf %107, %109 : vector<8x256xf32>
    %cst_28 = arith.constant 0.000000e+00 : f32
    %111 = vector.broadcast %cst_28 : f32 to vector<8x256xf32>
    %112 = arith.select %50, %110, %111 : vector<8x256xi1>, vector<8x256xf32>
    %113 = arith.addf %103, %112 : vector<8x256xf32>
    %c1_i32_29 = arith.constant 1 : i32
    %114 = tpu.dynamic_rotate %80 by %c1_i32_29 dim 1 : vector<8x256xf32>, i32 -> vector<8x256xf32>
    %c1_i32_30 = arith.constant 1 : i32
    %115 = tpu.dynamic_rotate %82 by %c1_i32_30 dim 1 : vector<8x256xf32>, i32 -> vector<8x256xf32>
    %116 = vector.broadcast %3 : f32 to vector<8x256xf32>
    %117 = arith.mulf %116, %114 : vector<8x256xf32>
    %118 = vector.broadcast %12 : f32 to vector<8x256xf32>
    %119 = arith.mulf %118, %115 : vector<8x256xf32>
    %120 = arith.addf %117, %119 : vector<8x256xf32>
    %cst_31 = arith.constant 0.000000e+00 : f32
    %121 = vector.broadcast %cst_31 : f32 to vector<8x256xf32>
    %122 = arith.select %52, %120, %121 : vector<8x256xi1>, vector<8x256xf32>
    %123 = arith.addf %113, %122 : vector<8x256xf32>
    %124 = vector.broadcast %4 : f32 to vector<8x256xf32>
    %125 = arith.mulf %124, %80 : vector<8x256xf32>
    %126 = vector.broadcast %13 : f32 to vector<8x256xf32>
    %127 = arith.mulf %126, %82 : vector<8x256xf32>
    %128 = arith.addf %125, %127 : vector<8x256xf32>
    %129 = arith.addf %123, %128 : vector<8x256xf32>
    %c255_i32 = arith.constant 255 : i32
    %130 = tpu.dynamic_rotate %80 by %c255_i32 dim 1 : vector<8x256xf32>, i32 -> vector<8x256xf32>
    %c255_i32_32 = arith.constant 255 : i32
    %131 = tpu.dynamic_rotate %82 by %c255_i32_32 dim 1 : vector<8x256xf32>, i32 -> vector<8x256xf32>
    %132 = vector.broadcast %5 : f32 to vector<8x256xf32>
    %133 = arith.mulf %132, %130 : vector<8x256xf32>
    %134 = vector.broadcast %14 : f32 to vector<8x256xf32>
    %135 = arith.mulf %134, %131 : vector<8x256xf32>
    %136 = arith.addf %133, %135 : vector<8x256xf32>
    %cst_33 = arith.constant 0.000000e+00 : f32
    %137 = vector.broadcast %cst_33 : f32 to vector<8x256xf32>
    %138 = arith.select %54, %136, %137 : vector<8x256xi1>, vector<8x256xf32>
    %139 = arith.addf %129, %138 : vector<8x256xf32>
    %c241_i32 = arith.constant 241 : i32
    %140 = tpu.dynamic_rotate %80 by %c241_i32 dim 1 : vector<8x256xf32>, i32 -> vector<8x256xf32>
    %c241_i32_34 = arith.constant 241 : i32
    %141 = tpu.dynamic_rotate %82 by %c241_i32_34 dim 1 : vector<8x256xf32>, i32 -> vector<8x256xf32>
    %142 = vector.broadcast %6 : f32 to vector<8x256xf32>
    %143 = arith.mulf %142, %140 : vector<8x256xf32>
    %144 = vector.broadcast %15 : f32 to vector<8x256xf32>
    %145 = arith.mulf %144, %141 : vector<8x256xf32>
    %146 = arith.addf %143, %145 : vector<8x256xf32>
    %cst_35 = arith.constant 0.000000e+00 : f32
    %147 = vector.broadcast %cst_35 : f32 to vector<8x256xf32>
    %148 = arith.select %59, %146, %147 : vector<8x256xi1>, vector<8x256xf32>
    %149 = arith.addf %139, %148 : vector<8x256xf32>
    %c240_i32_36 = arith.constant 240 : i32
    %150 = tpu.dynamic_rotate %80 by %c240_i32_36 dim 1 : vector<8x256xf32>, i32 -> vector<8x256xf32>
    %c240_i32_37 = arith.constant 240 : i32
    %151 = tpu.dynamic_rotate %82 by %c240_i32_37 dim 1 : vector<8x256xf32>, i32 -> vector<8x256xf32>
    %152 = vector.broadcast %7 : f32 to vector<8x256xf32>
    %153 = arith.mulf %152, %150 : vector<8x256xf32>
    %154 = vector.broadcast %16 : f32 to vector<8x256xf32>
    %155 = arith.mulf %154, %151 : vector<8x256xf32>
    %156 = arith.addf %153, %155 : vector<8x256xf32>
    %cst_38 = arith.constant 0.000000e+00 : f32
    %157 = vector.broadcast %cst_38 : f32 to vector<8x256xf32>
    %158 = arith.select %61, %156, %157 : vector<8x256xi1>, vector<8x256xf32>
    %159 = arith.addf %149, %158 : vector<8x256xf32>
    %c239_i32 = arith.constant 239 : i32
    %160 = tpu.dynamic_rotate %80 by %c239_i32 dim 1 : vector<8x256xf32>, i32 -> vector<8x256xf32>
    %c239_i32_39 = arith.constant 239 : i32
    %161 = tpu.dynamic_rotate %82 by %c239_i32_39 dim 1 : vector<8x256xf32>, i32 -> vector<8x256xf32>
    %162 = vector.broadcast %8 : f32 to vector<8x256xf32>
    %163 = arith.mulf %162, %160 : vector<8x256xf32>
    %164 = vector.broadcast %17 : f32 to vector<8x256xf32>
    %165 = arith.mulf %164, %161 : vector<8x256xf32>
    %166 = arith.addf %163, %165 : vector<8x256xf32>
    %cst_40 = arith.constant 0.000000e+00 : f32
    %167 = vector.broadcast %cst_40 : f32 to vector<8x256xf32>
    %168 = arith.select %66, %166, %167 : vector<8x256xi1>, vector<8x256xf32>
    %169 = arith.addf %159, %168 : vector<8x256xf32>
    %170 = vector.extract_strided_slice %169 {offsets = [0, 0], sizes = [1, 256], strides = [1, 1]} : vector<8x256xf32> to vector<1x256xf32>
    %171 = arith.negf %170 : vector<1x256xf32>
    %172 = math.exp %171 : vector<1x256xf32>
    %cst_41 = arith.constant 1.000000e+00 : f32
    %173 = vector.broadcast %cst_41 : f32 to vector<1x256xf32>
    %174 = arith.addf %173, %172 : vector<1x256xf32>
    %175 = arith.divf %173, %174 : vector<1x256xf32>
    %176 = vector.shape_cast %175 : vector<1x256xf32> to vector<1x256xf32>
    %177 = vector.broadcast %176 : vector<1x256xf32> to vector<4x256xf32>
    %c0_42 = arith.constant 0 : index
    %c0_43 = arith.constant 0 : index
    %c0_44 = arith.constant 0 : index
    %178 = vector.load %arg2[%c0_42, %c0_43, %c0_44] : memref<2x4x256xf32, #tpu.memory_space<vmem>>, vector<1x4x256xf32>
    %179 = vector.shape_cast %178 : vector<1x4x256xf32> to vector<4x256xf32>
    %180 = arith.mulf %179, %177 : vector<4x256xf32>
    %c0_45 = arith.constant 0 : index
    %c0_46 = arith.constant 0 : index
    %c0_47 = arith.constant 0 : index
    %181 = vector.load %arg3[%c0_45, %c0_46, %c0_47] : memref<2x4x256xf32, #tpu.memory_space<vmem>>, vector<1x4x256xf32>
    %182 = vector.shape_cast %181 : vector<1x4x256xf32> to vector<4x256xf32>
    %183 = vector.shape_cast %180 : vector<4x256xf32> to vector<1x4x256xf32>
    tpu.vector_store %arg3[%c0_45, %c0_46, %c0_47], %183 {strides = array<i32>} : memref<2x4x256xf32, #tpu.memory_space<vmem>>, vector<1x4x256xf32>,
    %cst_48 = arith.constant 0.000000e+00 : f32
    %184 = vector.broadcast %cst_48 : f32 to vector<4x256xf32>
    %cst_49 = arith.constant 0xFF800000 : f32
    %185 = vector.broadcast %cst_49 : f32 to vector<4x256xf32>
    %c1_50 = arith.constant 1 : index
    %c0_51 = arith.constant 0 : index
    %c0_52 = arith.constant 0 : index
    %186 = vector.load %arg2[%c1_50, %c0_51, %c0_52] : memref<2x4x256xf32, #tpu.memory_space<vmem>>, vector<1x4x256xf32>
    %187 = vector.shape_cast %186 : vector<1x4x256xf32> to vector<4x256xf32>
    %188 = arith.addf %184, %187 : vector<4x256xf32>
    %189 = arith.maximumf %185, %187 : vector<4x256xf32>
    %cst_53 = arith.constant dense<0.000000e+00> : vector<256xf32>
    %190 = vector.multi_reduction <add>, %188, %cst_53 [0] : vector<4x256xf32> to vector<256xf32>
    %191 = vector.shape_cast %190 : vector<256xf32> to vector<1x256xf32>
    %cst_54 = arith.constant 2.500000e-01 : f32
    %192 = vector.broadcast %cst_54 : f32 to vector<1x256xf32>
    %193 = arith.mulf %191, %192 : vector<1x256xf32>
    %cst_55 = arith.constant dense<0xFF800000> : vector<256xf32>
    %194 = vector.multi_reduction <maximumf>, %189, %cst_55 [0] : vector<4x256xf32> to vector<256xf32>
    %195 = vector.shape_cast %194 : vector<256xf32> to vector<1x256xf32>
    %196 = vector.shape_cast %193 : vector<1x256xf32> to vector<1x256xf32>
    %197 = vector.broadcast %196 : vector<1x256xf32> to vector<8x256xf32>
    %198 = vector.shape_cast %195 : vector<1x256xf32> to vector<1x256xf32>
    %199 = vector.broadcast %198 : vector<1x256xf32> to vector<8x256xf32>
    %cst_56 = arith.constant 0.000000e+00 : f32
    %200 = vector.broadcast %cst_56 : f32 to vector<8x256xf32>
    %c17_i32_57 = arith.constant 17 : i32
    %201 = tpu.dynamic_rotate %197 by %c17_i32_57 dim 1 : vector<8x256xf32>, i32 -> vector<8x256xf32>
    %c17_i32_58 = arith.constant 17 : i32
    %202 = tpu.dynamic_rotate %199 by %c17_i32_58 dim 1 : vector<8x256xf32>, i32 -> vector<8x256xf32>
    %203 = vector.broadcast %0 : f32 to vector<8x256xf32>
    %204 = arith.mulf %203, %201 : vector<8x256xf32>
    %205 = vector.broadcast %9 : f32 to vector<8x256xf32>
    %206 = arith.mulf %205, %202 : vector<8x256xf32>
    %207 = arith.addf %204, %206 : vector<8x256xf32>
    %cst_59 = arith.constant 0.000000e+00 : f32
    %208 = vector.broadcast %cst_59 : f32 to vector<8x256xf32>
    %209 = arith.select %43, %207, %208 : vector<8x256xi1>, vector<8x256xf32>
    %210 = arith.addf %200, %209 : vector<8x256xf32>
    %c16_i32_60 = arith.constant 16 : i32
    %211 = tpu.dynamic_rotate %197 by %c16_i32_60 dim 1 : vector<8x256xf32>, i32 -> vector<8x256xf32>
    %c16_i32_61 = arith.constant 16 : i32
    %212 = tpu.dynamic_rotate %199 by %c16_i32_61 dim 1 : vector<8x256xf32>, i32 -> vector<8x256xf32>
    %213 = vector.broadcast %1 : f32 to vector<8x256xf32>
    %214 = arith.mulf %213, %211 : vector<8x256xf32>
    %215 = vector.broadcast %10 : f32 to vector<8x256xf32>
    %216 = arith.mulf %215, %212 : vector<8x256xf32>
    %217 = arith.addf %214, %216 : vector<8x256xf32>
    %cst_62 = arith.constant 0.000000e+00 : f32
    %218 = vector.broadcast %cst_62 : f32 to vector<8x256xf32>
    %219 = arith.select %45, %217, %218 : vector<8x256xi1>, vector<8x256xf32>
    %220 = arith.addf %210, %219 : vector<8x256xf32>
    %c15_i32_63 = arith.constant 15 : i32
    %221 = tpu.dynamic_rotate %197 by %c15_i32_63 dim 1 : vector<8x256xf32>, i32 -> vector<8x256xf32>
    %c15_i32_64 = arith.constant 15 : i32
    %222 = tpu.dynamic_rotate %199 by %c15_i32_64 dim 1 : vector<8x256xf32>, i32 -> vector<8x256xf32>
    %223 = vector.broadcast %2 : f32 to vector<8x256xf32>
    %224 = arith.mulf %223, %221 : vector<8x256xf32>
    %225 = vector.broadcast %11 : f32 to vector<8x256xf32>
    %226 = arith.mulf %225, %222 : vector<8x256xf32>
    %227 = arith.addf %224, %226 : vector<8x256xf32>
    %cst_65 = arith.constant 0.000000e+00 : f32
    %228 = vector.broadcast %cst_65 : f32 to vector<8x256xf32>
    %229 = arith.select %50, %227, %228 : vector<8x256xi1>, vector<8x256xf32>
    %230 = arith.addf %220, %229 : vector<8x256xf32>
    %c1_i32_66 = arith.constant 1 : i32
    %231 = tpu.dynamic_rotate %197 by %c1_i32_66 dim 1 : vector<8x256xf32>, i32 -> vector<8x256xf32>
    %c1_i32_67 = arith.constant 1 : i32
    %232 = tpu.dynamic_rotate %199 by %c1_i32_67 dim 1 : vector<8x256xf32>, i32 -> vector<8x256xf32>
    %233 = vector.broadcast %3 : f32 to vector<8x256xf32>
    %234 = arith.mulf %233, %231 : vector<8x256xf32>
    %235 = vector.broadcast %12 : f32 to vector<8x256xf32>
    %236 = arith.mulf %235, %232 : vector<8x256xf32>
    %237 = arith.addf %234, %236 : vector<8x256xf32>
    %cst_68 = arith.constant 0.000000e+00 : f32
    %238 = vector.broadcast %cst_68 : f32 to vector<8x256xf32>
    %239 = arith.select %52, %237, %238 : vector<8x256xi1>, vector<8x256xf32>
    %240 = arith.addf %230, %239 : vector<8x256xf32>
    %241 = vector.broadcast %4 : f32 to vector<8x256xf32>
    %242 = arith.mulf %241, %197 : vector<8x256xf32>
    %243 = vector.broadcast %13 : f32 to vector<8x256xf32>
    %244 = arith.mulf %243, %199 : vector<8x256xf32>
    %245 = arith.addf %242, %244 : vector<8x256xf32>
    %246 = arith.addf %240, %245 : vector<8x256xf32>
    %c255_i32_69 = arith.constant 255 : i32
    %247 = tpu.dynamic_rotate %197 by %c255_i32_69 dim 1 : vector<8x256xf32>, i32 -> vector<8x256xf32>
    %c255_i32_70 = arith.constant 255 : i32
    %248 = tpu.dynamic_rotate %199 by %c255_i32_70 dim 1 : vector<8x256xf32>, i32 -> vector<8x256xf32>
    %249 = vector.broadcast %5 : f32 to vector<8x256xf32>
    %250 = arith.mulf %249, %247 : vector<8x256xf32>
    %251 = vector.broadcast %14 : f32 to vector<8x256xf32>
    %252 = arith.mulf %251, %248 : vector<8x256xf32>
    %253 = arith.addf %250, %252 : vector<8x256xf32>
    %cst_71 = arith.constant 0.000000e+00 : f32
    %254 = vector.broadcast %cst_71 : f32 to vector<8x256xf32>
    %255 = arith.select %54, %253, %254 : vector<8x256xi1>, vector<8x256xf32>
    %256 = arith.addf %246, %255 : vector<8x256xf32>
    %c241_i32_72 = arith.constant 241 : i32
    %257 = tpu.dynamic_rotate %197 by %c241_i32_72 dim 1 : vector<8x256xf32>, i32 -> vector<8x256xf32>
    %c241_i32_73 = arith.constant 241 : i32
    %258 = tpu.dynamic_rotate %199 by %c241_i32_73 dim 1 : vector<8x256xf32>, i32 -> vector<8x256xf32>
    %259 = vector.broadcast %6 : f32 to vector<8x256xf32>
    %260 = arith.mulf %259, %257 : vector<8x256xf32>
    %261 = vector.broadcast %15 : f32 to vector<8x256xf32>
    %262 = arith.mulf %261, %258 : vector<8x256xf32>
    %263 = arith.addf %260, %262 : vector<8x256xf32>
    %cst_74 = arith.constant 0.000000e+00 : f32
    %264 = vector.broadcast %cst_74 : f32 to vector<8x256xf32>
    %265 = arith.select %59, %263, %264 : vector<8x256xi1>, vector<8x256xf32>
    %266 = arith.addf %256, %265 : vector<8x256xf32>
    %c240_i32_75 = arith.constant 240 : i32
    %267 = tpu.dynamic_rotate %197 by %c240_i32_75 dim 1 : vector<8x256xf32>, i32 -> vector<8x256xf32>
    %c240_i32_76 = arith.constant 240 : i32
    %268 = tpu.dynamic_rotate %199 by %c240_i32_76 dim 1 : vector<8x256xf32>, i32 -> vector<8x256xf32>
    %269 = vector.broadcast %7 : f32 to vector<8x256xf32>
    %270 = arith.mulf %269, %267 : vector<8x256xf32>
    %271 = vector.broadcast %16 : f32 to vector<8x256xf32>
    %272 = arith.mulf %271, %268 : vector<8x256xf32>
    %273 = arith.addf %270, %272 : vector<8x256xf32>
    %cst_77 = arith.constant 0.000000e+00 : f32
    %274 = vector.broadcast %cst_77 : f32 to vector<8x256xf32>
    %275 = arith.select %61, %273, %274 : vector<8x256xi1>, vector<8x256xf32>
    %276 = arith.addf %266, %275 : vector<8x256xf32>
    %c239_i32_78 = arith.constant 239 : i32
    %277 = tpu.dynamic_rotate %197 by %c239_i32_78 dim 1 : vector<8x256xf32>, i32 -> vector<8x256xf32>
    %c239_i32_79 = arith.constant 239 : i32
    %278 = tpu.dynamic_rotate %199 by %c239_i32_79 dim 1 : vector<8x256xf32>, i32 -> vector<8x256xf32>
    %279 = vector.broadcast %8 : f32 to vector<8x256xf32>
    %280 = arith.mulf %279, %277 : vector<8x256xf32>
    %281 = vector.broadcast %17 : f32 to vector<8x256xf32>
    %282 = arith.mulf %281, %278 : vector<8x256xf32>
    %283 = arith.addf %280, %282 : vector<8x256xf32>
    %cst_80 = arith.constant 0.000000e+00 : f32
    %284 = vector.broadcast %cst_80 : f32 to vector<8x256xf32>
    %285 = arith.select %66, %283, %284 : vector<8x256xi1>, vector<8x256xf32>
    %286 = arith.addf %276, %285 : vector<8x256xf32>
    %287 = vector.extract_strided_slice %286 {offsets = [0, 0], sizes = [1, 256], strides = [1, 1]} : vector<8x256xf32> to vector<1x256xf32>
    %288 = arith.negf %287 : vector<1x256xf32>
    %289 = math.exp %288 : vector<1x256xf32>
    %cst_81 = arith.constant 1.000000e+00 : f32
    %290 = vector.broadcast %cst_81 : f32 to vector<1x256xf32>
    %291 = arith.addf %290, %289 : vector<1x256xf32>
    %292 = arith.divf %290, %291 : vector<1x256xf32>
    %293 = vector.shape_cast %292 : vector<1x256xf32> to vector<1x256xf32>
    %294 = vector.broadcast %293 : vector<1x256xf32> to vector<4x256xf32>
    %c1_82 = arith.constant 1 : index
    %c0_83 = arith.constant 0 : index
    %c0_84 = arith.constant 0 : index
    %295 = vector.load %arg2[%c1_82, %c0_83, %c0_84] : memref<2x4x256xf32, #tpu.memory_space<vmem>>, vector<1x4x256xf32>
    %296 = vector.shape_cast %295 : vector<1x4x256xf32> to vector<4x256xf32>
    %297 = arith.mulf %296, %294 : vector<4x256xf32>
    %c1_85 = arith.constant 1 : index
    %c0_86 = arith.constant 0 : index
    %c0_87 = arith.constant 0 : index
    %298 = vector.load %arg3[%c1_85, %c0_86, %c0_87] : memref<2x4x256xf32, #tpu.memory_space<vmem>>, vector<1x4x256xf32>
    %299 = vector.shape_cast %298 : vector<1x4x256xf32> to vector<4x256xf32>
    %300 = vector.shape_cast %297 : vector<4x256xf32> to vector<1x4x256xf32>
    tpu.vector_store %arg3[%c1_85, %c0_86, %c0_87], %300 {strides = array<i32>} : memref<2x4x256xf32, #tpu.memory_space<vmem>>, vector<1x4x256xf32>,
    return
  }
  func.func @transform_0(%arg0: i32) -> i32 {
    %c0_i32 = arith.constant 0 : i32
    %c0_i32_0 = arith.constant 0 : i32
    return %c0_i32 : i32
  }
  func.func @transform_1(%arg0: i32) -> (i32, i32, i32) {
    %c0_i32 = arith.constant 0 : i32
    %c0_i32_0 = arith.constant 0 : i32
    %c0_i32_1 = arith.constant 0 : i32
    return %arg0, %c0_i32, %c0_i32_0 : i32, i32, i32
  }
  func.func @transform_2(%arg0: i32) -> (i32, i32, i32) {
    %c0_i32 = arith.constant 0 : i32
    %c0_i32_0 = arith.constant 0 : i32
    %c0_i32_1 = arith.constant 0 : i32
    return %arg0, %c0_i32, %c0_i32_0 : i32, i32, i32
  }
}

</mosaic_0001>

<bundles_post_ra>
// kernel: tpu_custom_call.1
= control target key start
LH: loop header
LB: loop body
LE: loop exit
PB: predicated region body
PF: predicated region fallthrough
CT: control target
= control target key end

     0   :  { %7 = vsyncpa [#allocation5], 0  ;;  %s1353_s0 = inlined_call_operand.hbm [shape: f32[18], index: 0, kind: input, shape index: {}]   ;;  %s1354_s1 = inlined_call_operand.hbm [shape: f32[2,4,256], index: 1, kind: input, shape index: {}]   ;;  %s1355_s2 = inlined_call_operand.hbm [shape: f32[2,4,256], index: 2, kind: output, shape index: {}]  }
   0x1   :  { %8 = vsyncpa [#allocation3], 0 }
   0x2   :  { %9 = vsyncpa [#allocation4], 0  ;;  %s701_s11 = scalar_lea.hbm %s1353_s0, 16 }
   0x3   :  { %p702_p0 = scmp.ne.s32.totalorder %s1353_s0, %s701_s11  ;;  %p705_p1 = scmp.lt.u32.totalorder %s701_s11, %s1353_s0 }
   0x5   :  { %p707_p2 = pnand %p705_p1, %p702_p0 }
   0x7   :  { %710 = shalt.err (!%p707_p2)
}
   0x8   :  { %s761_s16 = smov [#allocation2]   ;;  %s762_s19 = smov [#allocation6]  }
   0x9   :  { %17 = dma.hbm_to_smem %s1353_s0, 16, %s761_s16, [#allocation5]  }
   0xa   :  { %s23_s20 = sshll.u32 %s762_s19, 4  ;;  %s711_s23 = scalar_lea.hbm %s1354_s1, 256  ;;  %s24_s20 = int_to_ptr.vmem [resolvable:$true] %s23_s20 }
   0xb   :  { %p712_p3 = scmp.ne.s32.totalorder %s1354_s1, %s711_s23  ;;  %p715_p4 = scmp.lt.u32.totalorder %s711_s23, %s1354_s1 }
   0xd   :  { %p717_p5 = pnand %p715_p4, %p712_p3 }
   0xf   :  { %720 = shalt.err (!%p717_p5)
}
  0x10   :  { %s721_s28 = scalar_lea.vmem %s24_s20, 256  ;;  %p726_p7 = scmp.lt.s32.totalorder %s24_s20, %s24_s20 }
  0x11   :  { %p722_p6 = scmp.ne.s32.totalorder %s24_s20, %s721_s28  ;;  %p727_p8 = scmp.lt.s32.totalorder %s721_s28, %s721_s28 }
  0x13   :  { %p728_p9 = por %p727_p8, %p726_p7 }
  0x15   :  { %p729_p10 = pnand %p728_p9, %p722_p6 }
  0x17   :  { %732 = shalt.err (!%p729_p10)
}
  0x18   :  { %s763_s0 = smov 128   ;;  %s764_s29 = smov 8  }
  0x19   :  { %29 = dma.hbm_to_vmem [thread:$0]  %s1354_s1, 256, %s24_s20, [#allocation3], %s763_s0, %s763_s0, %s764_s29  }
  0x1a   :  { %755 = dma.done.wait [#allocation5], 16  }
  0x1b   :  { %756 = vsyncadd [#allocation5], 4294967280 }
  0x1c   :  { %757 = dma.done.wait [#allocation3], 256  }
  0x1d   :  { %758 = vsyncadd [#allocation3], 4294967040 }
  0x1e   :  { %36 = sfence }
  0x1f   :  { %v97_v0 = vld [vmem:[#allocation6] sm:$0xff]  ;;  %vm102_vm0 = vcmask 1043456   ;;  %v373_v1 = vld [vmem:[#allocation6 + $0x8] sm:$0xff]  ;;  %s765_s1 = smov 16   ;;  %s766_s4 = smov 17  }
  0x20   :  { %v122_v2 = vsel %vm102_vm0, %v97_v0, -inf  ;;  %v103_v3 = vsel %vm102_vm0, %v97_v0, 0.0  ;;  %v100_v4 = vcombine.high %v97_v0, %v97_v0  ;;  %v378_v5 = vsel %vm102_vm0, %v373_v1, 0.0  ;;  %s767_s5 = smov 15   ;;  %s768_s6 = smov 1  }
  0x21   :  { %v123_v6 = vrot.slane %v122_v2, 4  ;;  %v104_v7 = vrot.slane %v103_v3, 4  ;;  %v379_v8 = vrot.slane %v378_v5, 4  ;;  %v376_v9 = vcombine.high %v373_v1, %v373_v1  ;;  %s769_s7 = smov 127   ;;  %s770_s8 = smov 113  }
  0x22   :  { %v129_v10 = vsel %vm102_vm0, %v100_v4, -inf  ;;  %v110_v11 = vsel %vm102_vm0, %v100_v4, 0.0  ;;  %v397_v19 = vsel %vm102_vm0, %v373_v1, -inf  ;;  %s771_s9 = smov 112   ;;  %v55_v0 = vlaneseq  ;;  %s772_s10 = smov 111  }
  0x23   :  { %v124_v12 = vmax.f32 %v122_v2, %v123_v6  ;;  %v105_v13 = vadd.f32 %v104_v7, %v103_v3  ;;  %v130_v14 = vrot.slane %v129_v10, 4  ;;  %v380_v15 = vadd.f32 %v379_v8, %v378_v5  ;;  %s649_s11 = sld [smem:[#allocation2 + $0xa]]  ;;  %s640_s12 = sld [smem:[#allocation2 + $0x1]] }
  0x24   :  { %v111_v16 = vrot.slane %v110_v11, 4  ;;  %v385_v17 = vsel %vm102_vm0, %v376_v9, 0.0  ;;  %v404_v18 = vsel %vm102_vm0, %v376_v9, -inf  ;;  %v398_v29 = vrot.slane %v397_v19, 4  ;;  %s648_s13 = sld [smem:[#allocation2 + $0x9]]  ;;  %s37_s14 = sld [smem:[#allocation2]] }
  0x25   :  { %v125_v20 = vrot.slane %v124_v12, 2  ;;  %v106_v21 = vrot.slane %v105_v13, 2  ;;  %v131_v22 = vmax.f32 %v129_v10, %v130_v14  ;;  %v381_v23 = vrot.slane %v380_v15, 2  ;;  %s641_s15 = sld [smem:[#allocation2 + $0x2]]  ;;  %s650_s16 = sld [smem:[#allocation2 + $0xb]] }
  0x26   :  { %v112_v24 = vadd.f32 %v111_v16, %v110_v11  ;;  %v386_v25 = vrot.slane %v385_v17, 4  ;;  %v405_v33 = vrot.slane %v404_v18, 4  ;;  %v399_v44 = vmax.f32 %v397_v19, %v398_v29  ;;  %s643_s17 = sld [smem:[#allocation2 + $0x4]]  ;;  %s652_s18 = sld [smem:[#allocation2 + $0xd]] }
  0x27   :  { %v126_v26 = vmax.f32 %v124_v12, %v125_v20  ;;  %v107_v27 = vadd.f32 %v106_v21, %v105_v13  ;;  %v132_v28 = vrot.slane %v131_v22, 2  ;;  %v382_v30 = vadd.f32 %v381_v23, %v380_v15  ;;  %s651_s19 = sld [smem:[#allocation2 + $0xc]]  ;;  %s642_s20 = sld [smem:[#allocation2 + $0x3]] }
  0x28   :  { %v113_v31 = vrot.slane %v112_v24, 2  ;;  %v387_v32 = vadd.f32 %v386_v25, %v385_v17  ;;  %v406_v43 = vmax.f32 %v404_v18, %v405_v33  ;;  %v400_v49 = vrot.slane %v399_v44, 2  ;;  %s1042_s21 = sld [smem:[#allocation2 + $0x5]]  ;;  %s1049_s22 = sld [smem:[#allocation2 + $0xe]] }
  0x29   :  { %v127_v34 = vrot.slane %v126_v26, 1  ;;  %v108_v35 = vrot.slane %v107_v27, 1  ;;  %v133_v36 = vmax.f32 %v131_v22, %v132_v28  ;;  %v383_v42 = vrot.slane %v382_v30, 1  ;;  %s1059_s23 = sld [smem:[#allocation2 + $0x6]]  ;;  %s1061_s24 = sld [smem:[#allocation2 + $0xf]] }
  0x2a   :  { %v114_v37 = vadd.f32 %v113_v31, %v112_v24  ;;  %v388_v38 = vrot.slane %v387_v32, 2  ;;  %v407_v53 = vrot.slane %v406_v43, 2  ;;  %v401_v54 = vmax.f32 %v399_v44, %v400_v49  ;;  %s1079_s25 = sld [smem:[#allocation2 + $0x7]]  ;;  %s1089_s26 = sld [smem:[#allocation2 + $0x10]] }
  0x2b   :  { %v824_v39 = vmax.f32 %v126_v26, %v127_v34  ;;  %v109_v40 = vadd.f32 %v108_v35, %v107_v27  ;;  %v134_v41 = vrot.slane %v133_v36, 1  ;;  %v384_v50 = vadd.f32 %v383_v42, %v382_v30  ;;  %s1091_s27 = sld [smem:[#allocation2 + $0x8]]  ;;  %s1103_s28 = sld [smem:[#allocation2 + $0x11]] }
  0x2c   :  { %v115_v47 = vrot.slane %v114_v37, 1  ;;  %v389_v48 = vadd.f32 %v388_v38, %v387_v32  ;;  %v408_v58 = vmax.f32 %v406_v43, %v407_v53  ;;  %v402_v61 = vrot.slane %v401_v54, 1  ;;  %s773_s30 = smov [#allocation7]  }
  0x2d   :  { %168 = vrot.lane.b32.xlu0 %v824_v39, %s765_s1  ;;  %143 = vrot.lane.b32.xlu1 %v824_v39, %s766_s4  ;;  %v829_v45 = vmul.f32 0.25, %v109_v40  ;;  %v831_v46 = vmax.f32 %v133_v36, %v134_v41  ;;  %v839_v55 = vmul.f32 0.25, %v384_v50  ;;  %v903_v1 = vand.u32 127, %v55_v0  ;;  %s627_s3 = sshll.u32 %s773_s30, 4  ;;  %s628_s3 = int_to_ptr.vmem [resolvable:$true] %s627_s3 }
  0x2e   :  { %v116_v51 = vadd.f32 %v115_v47, %v114_v37  ;;  %v390_v52 = vrot.slane %v389_v48, 1  ;;  %v409_v60 = vrot.slane %v408_v58, 1  ;;  %v852_v63 = vmax.f32 %v401_v54, %v402_v61  ;;  %p738_p12 = scmp.lt.s32.totalorder %s628_s3, %s628_s3 }
  0x2f   :  { %v658_v2 = vadd.s32 4294967232, %v903_v1  ;;  %vm63_vm1 = vcmp.ge.s32.totalorder %v903_v1, 64  ;;  %vm140_vm2 = vcmp.lt.s32.totalorder %v903_v1, 17  ;;  %vm165_vm4 = vcmp.lt.s32.totalorder %v903_v1, 16 }
  0x30   :  { %v841_v56 = vmul.f32 0.25, %v116_v51  ;;  %v391_v57 = vadd.f32 %v390_v52, %v389_v48  ;;  %v850_v62 = vmax.f32 %v408_v58, %v409_v60  ;;  %v177_v17 = vstv %s649_s11 }
  0x31   :  { %136 = vrot.lane.b32.xlu0 %v829_v45, %s766_s4  ;;  %145 = vrot.lane.b32.xlu1 %v831_v46, %s766_s4  ;;  %v67_v3 = vsel %vm63_vm1, %v658_v2, %v903_v1  ;;  %v174_v18 = vstv %s640_s12  ;;  %v152_v28 = vstv %s648_s13  ;;  %vm81_vm6 = vcmp.ge.s32.totalorder %v903_v1, 16 }
  0x32   :  { %v846_v59 = vmul.f32 0.25, %v391_v57  ;;  %v660_v6 = vadd.s32 4294967264, %v67_v3  ;;  %vm69_vm3 = vcmp.ge.s32.totalorder %v67_v3, 32  ;;  %v149_v29 = vstv %s37_s14 }
  0x33   :  { %vm190_vm9 = vcmp.lt.s32.totalorder %v903_v1, 15  ;;  %vm215_vm12 = vcmp.lt.s32.totalorder %v903_v1, 1  ;;  %vm250_vm13 = vcmp.lt.s32.totalorder %v903_v1, 127  ;;  %vm275_vm14 = vcmp.lt.s32.totalorder %v903_v1, 113 }
  0x34   :  { %v73_v11 = vsel %vm69_vm3, %v660_v6, %v67_v3  ;;  %vm300_vm15 = vcmp.lt.s32.totalorder %v903_v1, 112  ;;  %vm325_vm1 = vcmp.lt.s32.totalorder %v903_v1, 111 }
  0x35   :  { %161 = vrot.lane.b32.xlu0 %v829_v45, %s765_s1  ;;  %170 = vrot.lane.b32.xlu1 %v831_v46, %s765_s1  ;;  %v662_v16 = vadd.s32 4294967280, %v73_v11  ;;  %vm75_vm5 = vcmp.ge.s32.totalorder %v73_v11, 16 }
  0x37   :  { %v932_v23 = vsel %vm75_vm5, %v662_v16, %v73_v11 }
  0x38   :  { %vm83_vm7 = vcmp.ge.s32.totalorder %v932_v23, 1  ;;  %vm87_vm10 = vcmp.lt.s32.totalorder %v932_v23, 15 }
  0x39   :  { %411 = vrot.lane.b32.xlu0 %v839_v55, %s766_s4  ;;  %163 = vrot.lane.b32.xlu1 %v841_v56, %s765_s1  ;;  %vm948_vm8 = vmand %vm81_vm6, %vm83_vm7 }
  0x3a   :  { %vm990_vm11 = vmand %vm81_vm6, %vm87_vm10 }
  0x3d   :  { %413 = vrot.lane.b32.xlu1 %v846_v59, %s766_s4  ;;  %138 = vrot.lane.b32.xlu0 %v841_v56, %s766_s4 }
  0x41   :  { %419 = vrot.lane.b32.xlu1 %v850_v62, %s766_s4  ;;  %417 = vrot.lane.b32.xlu0 %v852_v63, %s766_s4 }
  0x45   :  { %435 = vrot.lane.b32.xlu1 %v846_v59, %s765_s1  ;;  %433 = vrot.lane.b32.xlu0 %v839_v55, %s765_s1 }
  0x49   :  { %441 = vrot.lane.b32.xlu1 %v850_v62, %s765_s1  ;;  %439 = vrot.lane.b32.xlu0 %v852_v63, %s765_s1  ;;  %s733_s1 = scalar_lea.vmem %s628_s3, 256 }
  0x4a   :  { %p734_p11 = scmp.ne.s32.totalorder %s628_s3, %s733_s1  ;;  %p739_p13 = scmp.lt.s32.totalorder %s733_s1, %s733_s1 }
  0x4c   :  { %p740_p0 = por %p739_p13, %p738_p12 }
  0x4d   :  { %188 = vrot.lane.b32.xlu1 %v841_v56, %s767_s5  ;;  %186 = vrot.lane.b32.xlu0 %v829_v45, %s767_s5 }
  0x4e   :  { %p741_p1 = pnand %p740_p0, %p734_p11 }
  0x51   :  { %195 = vrot.lane.b32.xlu1 %v831_v46, %s767_s5  ;;  %193 = vrot.lane.b32.xlu0 %v824_v39, %s767_s5 }
  0x55   :  { %457 = vrot.lane.b32.xlu1 %v846_v59, %s767_s5  ;;  %455 = vrot.lane.b32.xlu0 %v839_v55, %s767_s5 }
  0x59   :  { %463 = vrot.lane.b32.xlu1 %v850_v62, %s767_s5  ;;  %461 = vrot.lane.b32.xlu0 %v852_v63, %s767_s5 }
  0x5d   :  { %213 = vrot.lane.b32.xlu1 %v841_v56, %s768_s6  ;;  %211 = vrot.lane.b32.xlu0 %v829_v45, %s768_s6 }
  0x61   :  { %220 = vrot.lane.b32.xlu1 %v831_v46, %s768_s6  ;;  %218 = vrot.lane.b32.xlu0 %v824_v39, %s768_s6 }
  0x65   :  { %479 = vrot.lane.b32.xlu1 %v846_v59, %s768_s6  ;;  %477 = vrot.lane.b32.xlu0 %v839_v55, %s768_s6 }
  0x69   :  { %485 = vrot.lane.b32.xlu1 %v850_v62, %s768_s6  ;;  %483 = vrot.lane.b32.xlu0 %v852_v63, %s768_s6 }
  0x6d   :  { %248 = vrot.lane.b32.xlu1 %v841_v56, %s769_s7  ;;  %246 = vrot.lane.b32.xlu0 %v829_v45, %s769_s7 }
  0x71   :  { %255 = vrot.lane.b32.xlu1 %v831_v46, %s769_s7  ;;  %253 = vrot.lane.b32.xlu0 %v824_v39, %s769_s7 }
  0x75   :  { %509 = vrot.lane.b32.xlu1 %v846_v59, %s769_s7  ;;  %507 = vrot.lane.b32.xlu0 %v839_v55, %s769_s7 }
  0x79   :  { %515 = vrot.lane.b32.xlu1 %v850_v62, %s769_s7  ;;  %513 = vrot.lane.b32.xlu0 %v852_v63, %s769_s7 }
  0x7d   :  { %273 = vrot.lane.b32.xlu1 %v841_v56, %s770_s8  ;;  %271 = vrot.lane.b32.xlu0 %v829_v45, %s770_s8 }
  0x81   :  { %280 = vrot.lane.b32.xlu1 %v831_v46, %s770_s8  ;;  %278 = vrot.lane.b32.xlu0 %v824_v39, %s770_s8 }
  0x85   :  { %531 = vrot.lane.b32.xlu1 %v846_v59, %s770_s8  ;;  %529 = vrot.lane.b32.xlu0 %v839_v55, %s770_s8 }
  0x89   :  { %537 = vrot.lane.b32.xlu1 %v850_v62, %s770_s8  ;;  %535 = vrot.lane.b32.xlu0 %v852_v63, %s770_s8 }
  0x8d   :  { %298 = vrot.lane.b32.xlu1 %v841_v56, %s771_s9  ;;  %296 = vrot.lane.b32.xlu0 %v829_v45, %s771_s9 }
  0x91   :  { %305 = vrot.lane.b32.xlu1 %v831_v46, %s771_s9  ;;  %303 = vrot.lane.b32.xlu0 %v824_v39, %s771_s9 }
  0x95   :  { %553 = vrot.lane.b32.xlu1 %v846_v59, %s771_s9  ;;  %551 = vrot.lane.b32.xlu0 %v839_v55, %s771_s9 }
  0x99   :  { %559 = vrot.lane.b32.xlu1 %v850_v62, %s771_s9  ;;  %557 = vrot.lane.b32.xlu0 %v852_v63, %s771_s9 }
  0x9d   :  { %323 = vrot.lane.b32.xlu1 %v841_v56, %s772_s10  ;;  %321 = vrot.lane.b32.xlu0 %v829_v45, %s772_s10 }
  0x9f   :  { %v169_v4 = vpop.permute.xlu0 %168  ;;  %v144_v5 = vpop.permute.xlu1 %143 }
  0xa1   :  { %330 = vrot.lane.b32.xlu1 %v831_v46, %s772_s10  ;;  %328 = vrot.lane.b32.xlu0 %v824_v39, %s772_s10 }
  0xa3   :  { %v137_v7 = vpop.permute.xlu0 %136  ;;  %v146_v8 = vpop.permute.xlu1 %145 }
  0xa4   :  { %v147_v9 = vsel %vm140_vm2, %v144_v5, %v146_v8  ;;  %v148_v10 = vsel %vm140_vm2, %v146_v8, %v144_v5 }
  0xa5   :  { %575 = vrot.lane.b32.xlu1 %v846_v59, %s772_s10  ;;  %573 = vrot.lane.b32.xlu0 %v839_v55, %s772_s10  ;;  %v153_v38 = vmul.f32 %v152_v28, %v148_v10  ;;  %v154_v41 = vmul.f32 %v152_v28, %v147_v9 }
  0xa7   :  { %v162_v12 = vpop.permute.xlu0 %161  ;;  %v171_v13 = vpop.permute.xlu1 %170 }
  0xa8   :  { %v172_v14 = vsel %vm165_vm4, %v169_v4, %v171_v13  ;;  %v173_v15 = vsel %vm165_vm4, %v171_v13, %v169_v4 }
  0xa9   :  { %581 = vrot.lane.b32.xlu1 %v850_v62, %s772_s10  ;;  %579 = vrot.lane.b32.xlu0 %v852_v63, %s772_s10  ;;  %v178_v24 = vmul.f32 %v177_v17, %v173_v15  ;;  %v179_v25 = vmul.f32 %v177_v17, %v172_v14 }
  0xab   :  { %v412_v19 = vpop.permute.xlu0 %411  ;;  %v164_v20 = vpop.permute.xlu1 %163 }
  0xac   :  { %v166_v21 = vsel %vm165_vm4, %v162_v12, %v164_v20  ;;  %v167_v22 = vsel %vm165_vm4, %v164_v20, %v162_v12 }
  0xad   :  { %v175_v26 = vmul.f32 %v174_v18, %v167_v22  ;;  %v176_v27 = vmul.f32 %v174_v18, %v166_v21 }
  0xaf   :  { %v180_v30 = vadd.f32 %v178_v24, %v175_v26  ;;  %v181_v31 = vadd.f32 %v179_v25, %v176_v27  ;;  %v414_v32 = vpop.permute.xlu1 %413  ;;  %v139_v33 = vpop.permute.xlu0 %138 }
  0xb0   :  { %v415_v34 = vsel %vm140_vm2, %v412_v19, %v414_v32  ;;  %v416_v35 = vsel %vm140_vm2, %v414_v32, %v412_v19  ;;  %v141_v36 = vsel %vm140_vm2, %v137_v7, %v139_v33  ;;  %v142_v37 = vsel %vm140_vm2, %v139_v33, %v137_v7 }
  0xb1   :  { %v150_v40 = vmul.f32 %v149_v29, %v142_v37  ;;  %v151_v43 = vmul.f32 %v149_v29, %v141_v36  ;;  %v182_v44 = vsel %vm81_vm6, %v180_v30, 0.0  ;;  %v423_v50 = vmul.f32 %v416_v35, %v149_v29 }
  0xb2   :  { %v424_v54 = vmul.f32 %v415_v34, %v149_v29  ;;  %v199_v30 = vstv %s641_s15 }
  0xb3   :  { %v155_v47 = vadd.f32 %v153_v38, %v150_v40  ;;  %v420_v48 = vpop.permute.xlu1 %419  ;;  %v418_v49 = vpop.permute.xlu0 %417  ;;  %v156_v51 = vadd.f32 %v154_v41, %v151_v43 }
  0xb4   :  { %v421_v52 = vsel %vm140_vm2, %v418_v49, %v420_v48  ;;  %v422_v53 = vsel %vm140_vm2, %v420_v48, %v418_v49 }
  0xb5   :  { %v157_v57 = vsel %vm948_vm8, %v155_v47, 0.0  ;;  %v425_v58 = vmul.f32 %v422_v53, %v152_v28  ;;  %v426_v60 = vmul.f32 %v421_v52, %v152_v28  ;;  %v158_v61 = vsel %vm83_vm7, %v156_v51, 0.0 }
  0xb6   :  { %v184_v2 = vadd.f32 %v182_v44, %v157_v57  ;;  %v185_v3 = vadd.f32 %v181_v31, %v158_v61  ;;  %v202_v31 = vstv %s650_s16 }
  0xb7   :  { %v427_v4 = vadd.f32 %v425_v58, %v423_v50  ;;  %v428_v5 = vadd.f32 %v426_v60, %v424_v54  ;;  %v436_v6 = vpop.permute.xlu1 %435  ;;  %v434_v7 = vpop.permute.xlu0 %433 }
  0xb8   :  { %v437_v8 = vsel %vm165_vm4, %v434_v7, %v436_v6  ;;  %v438_v9 = vsel %vm165_vm4, %v436_v6, %v434_v7 }
  0xb9   :  { %v445_v14 = vmul.f32 %v438_v9, %v174_v18  ;;  %v446_v15 = vmul.f32 %v437_v8, %v174_v18  ;;  %v430_v25 = vsel %vm83_vm7, %v428_v5, 0.0  ;;  %v429_v28 = vsel %vm948_vm8, %v427_v4, 0.0 }
  0xbb   :  { %v442_v10 = vpop.permute.xlu1 %441  ;;  %v440_v11 = vpop.permute.xlu0 %439 }
  0xbc   :  { %v443_v12 = vsel %vm165_vm4, %v440_v11, %v442_v10  ;;  %v444_v13 = vsel %vm165_vm4, %v442_v10, %v440_v11 }
  0xbd   :  { %v447_v16 = vmul.f32 %v444_v13, %v177_v17  ;;  %v448_v19 = vmul.f32 %v443_v12, %v177_v17 }
  0xbf   :  { %v449_v20 = vadd.f32 %v447_v16, %v445_v14  ;;  %v450_v21 = vadd.f32 %v448_v19, %v446_v15  ;;  %v189_v22 = vpop.permute.xlu1 %188  ;;  %v187_v24 = vpop.permute.xlu0 %186 }
  0xc0   :  { %v191_v26 = vsel %vm190_vm9, %v187_v24, %v189_v22  ;;  %v192_v27 = vsel %vm190_vm9, %v189_v22, %v187_v24 }
  0xc1   :  { %v451_v18 = vsel %vm81_vm6, %v449_v20, 0.0  ;;  %v454_v17 = vadd.f32 %v450_v21, %v430_v25  ;;  %v200_v36 = vmul.f32 %v199_v30, %v192_v27  ;;  %v201_v37 = vmul.f32 %v199_v30, %v191_v26 }
  0xc2   :  { %v453_v29 = vadd.f32 %v451_v18, %v429_v28 }
  0xc3   :  { %v196_v32 = vpop.permute.xlu1 %195  ;;  %v194_v33 = vpop.permute.xlu0 %193 }
  0xc4   :  { %v197_v34 = vsel %vm190_vm9, %v194_v33, %v196_v32  ;;  %v198_v35 = vsel %vm190_vm9, %v196_v32, %v194_v33 }
  0xc5   :  { %v203_v38 = vmul.f32 %v202_v31, %v198_v35  ;;  %v204_v40 = vmul.f32 %v202_v31, %v197_v34 }
  0xc7   :  { %v205_v42 = vadd.f32 %v203_v38, %v200_v36  ;;  %v206_v43 = vadd.f32 %v204_v40, %v201_v37  ;;  %v458_v44 = vpop.permute.xlu1 %457  ;;  %v456_v47 = vpop.permute.xlu0 %455  ;;  %v227_v40 = vstv %s651_s19 }
  0xc8   :  { %v459_v48 = vsel %vm190_vm9, %v456_v47, %v458_v44  ;;  %v460_v49 = vsel %vm190_vm9, %v458_v44, %v456_v47 }
  0xc9   :  { %v207_v50 = vsel %vm990_vm11, %v205_v42, 0.0  ;;  %v208_v51 = vsel %vm87_vm10, %v206_v43, 0.0  ;;  %v467_v61 = vmul.f32 %v460_v49, %v199_v30  ;;  %v468_v4 = vmul.f32 %v459_v48, %v199_v30 }
  0xca   :  { %v1002_v52 = vadd.f32 %v207_v50, %v184_v2  ;;  %v1004_v53 = vadd.f32 %v208_v51, %v185_v3  ;;  %v236_v30 = vstv %s643_s17  ;;  %v224_v43 = vstv %s642_s20 }
  0xcb   :  { %v464_v54 = vpop.permute.xlu1 %463  ;;  %v462_v57 = vpop.permute.xlu0 %461  ;;  %v237_v34 = vmul.f32 %v236_v30, %v829_v45  ;;  %v238_v35 = vmul.f32 %v236_v30, %v841_v56  ;;  %v499_v41 = vmul.f32 %v839_v55, %v236_v30  ;;  %v500_v55 = vmul.f32 %v846_v59, %v236_v30 }
  0xcc   :  { %v465_v58 = vsel %vm190_vm9, %v462_v57, %v464_v54  ;;  %v466_v60 = vsel %vm190_vm9, %v464_v54, %v462_v57  ;;  %v1085_v51 = vstv %s1042_s21 }
  0xcd   :  { %v469_v5 = vmul.f32 %v466_v60, %v202_v31  ;;  %v470_v6 = vmul.f32 %v465_v58, %v202_v31  ;;  %v239_v31 = vstv %s652_s18 }
  0xce   :  { %v240_v36 = vmul.f32 %v239_v31, %v824_v39  ;;  %v241_v37 = vmul.f32 %v239_v31, %v831_v46  ;;  %v501_v42 = vmul.f32 %v852_v63, %v239_v31  ;;  %v502_v63 = vmul.f32 %v850_v62, %v239_v31 }
  0xcf   :  { %v471_v7 = vadd.f32 %v469_v5, %v467_v61  ;;  %v472_v8 = vadd.f32 %v470_v6, %v468_v4  ;;  %v214_v9 = vpop.permute.xlu1 %213  ;;  %v212_v10 = vpop.permute.xlu0 %211  ;;  %v262_v5 = vstv %s1049_s22 }
  0xd0   :  { %v217_v39 = vsel %vm215_vm12, %v214_v9, %v212_v10  ;;  %v1075_v48 = vadd.f32 %v240_v36, %v237_v34  ;;  %v1077_v49 = vadd.f32 %v241_v37, %v238_v35  ;;  %v216_v50 = vsel %vm215_vm12, %v212_v10, %v214_v9 }
  0xd1   :  { %v473_v2 = vsel %vm990_vm11, %v471_v7, 0.0  ;;  %v474_v3 = vsel %vm87_vm10, %v472_v8, 0.0  ;;  %v1087_v59 = vadd.f32 %v501_v42, %v499_v41  ;;  %v225_v62 = vmul.f32 %v224_v43, %v217_v39 }
  0xd2   :  { %v1014_v11 = vadd.f32 %v473_v2, %v453_v29  ;;  %v1016_v12 = vadd.f32 %v474_v3, %v454_v17  ;;  %v1106_v6 = vadd.f32 %v502_v63, %v500_v55  ;;  %v226_v7 = vmul.f32 %v224_v43, %v216_v50 }
  0xd3   :  { %v221_v13 = vpop.permute.xlu1 %220  ;;  %v219_v14 = vpop.permute.xlu0 %218  ;;  %v1151_v42 = vstv %s1089_s26  ;;  %v1164_v63 = vstv %s1103_s28 }
  0xd4   :  { %v223_v38 = vsel %vm215_vm12, %v221_v13, %v219_v14  ;;  %v222_v46 = vsel %vm215_vm12, %v219_v14, %v221_v13  ;;  %v1122_v14 = vadd.s32 128, %v903_v1 }
  0xd5   :  { %v228_v44 = vmul.f32 %v227_v40, %v223_v38  ;;  %v229_v54 = vmul.f32 %v227_v40, %v222_v46  ;;  %v1146_v38 = vstv %s1079_s25 }
  0xd6   :  { %vm92_vm0 = vcmp.lt.s32.totalorder %v1122_v14, 240 }
  0xd7   :  { %v1018_v15 = vpop.permute.xlu1 %479  ;;  %v1020_v16 = vpop.permute.xlu0 %477  ;;  %v230_v8 = vadd.f32 %v228_v44, %v225_v62  ;;  %vm1234_vm2 = vmand %vm92_vm0, %vm83_vm7 }
  0xd8   :  { %v482_v57 = vsel %vm215_vm12, %v1018_v15, %v1020_v16  ;;  %v481_v9 = vsel %vm215_vm12, %v1020_v16, %v1018_v15  ;;  %v1129_v16 = vstv %s1059_s23  ;;  %vm1305_vm3 = vmand %vm92_vm0, %vm87_vm10 }
  0xd9   :  { %v489_v2 = vmul.f32 %v482_v57, %v224_v43  ;;  %v232_v36 = vsel %vm83_vm7, %v230_v8, 0.0 }
  0xda   :  { %v234_v44 = vadd.f32 %v232_v36, %v1002_v52 }
  0xdb   :  { %v486_v19 = vpop.permute.xlu1 %485  ;;  %v484_v20 = vpop.permute.xlu0 %483 }
  0xdc   :  { %v488_v47 = vsel %vm215_vm12, %v486_v19, %v484_v20  ;;  %v487_v58 = vsel %vm215_vm12, %v484_v20, %v486_v19  ;;  %v231_v19 = vadd.f32 %v229_v54, %v226_v7  ;;  %v1132_v20 = vstv %s1061_s24 }
  0xdd   :  { %v491_v4 = vmul.f32 %v488_v47, %v227_v40  ;;  %v492_v3 = vmul.f32 %v487_v58, %v227_v40 }
  0xdf   :  { %v1022_v21 = vpop.permute.xlu1 %248  ;;  %v1024_v22 = vpop.permute.xlu0 %246 }
  0xe0   :  { %v251_v15 = vsel %vm250_vm13, %v1024_v22, %v1022_v21  ;;  %v252_v34 = vsel %vm250_vm13, %v1022_v21, %v1024_v22  ;;  %v233_v21 = vsel %vm83_vm7, %v231_v19, 0.0 }
  0xe1   :  { %v260_v41 = vmul.f32 %v1085_v51, %v251_v15  ;;  %v261_v22 = vmul.f32 %v1085_v51, %v252_v34 }
  0xe3   :  { %v1026_v24 = vpop.permute.xlu1 %255  ;;  %v1028_v25 = vpop.permute.xlu0 %253 }
  0xe4   :  { %v257_v10 = vsel %vm250_vm13, %v1028_v25, %v1026_v24  ;;  %v258_v13 = vsel %vm250_vm13, %v1026_v24, %v1028_v25  ;;  %v490_v24 = vmul.f32 %v481_v9, %v224_v43  ;;  %v493_v25 = vadd.f32 %v491_v4, %v489_v2 }
  0xe5   :  { %v263_v35 = vmul.f32 %v262_v5, %v257_v10  ;;  %v264_v37 = vmul.f32 %v262_v5, %v258_v13  ;;  %v1154_v43 = vstv %s1091_s27  ;;  %v235_v4 = vadd.f32 %v233_v21, %v1004_v53 }
  0xe6   :  { %v494_v40 = vadd.f32 %v492_v3, %v490_v24  ;;  %v495_v47 = vsel %vm83_vm7, %v493_v25, 0.0 }
  0xe7   :  { %v1030_v26 = vpop.permute.xlu1 %509  ;;  %v1032_v27 = vpop.permute.xlu0 %507  ;;  %v265_v50 = vadd.f32 %v263_v35, %v260_v41  ;;  %v266_v54 = vadd.f32 %v264_v37, %v261_v22  ;;  %v497_v8 = vadd.f32 %v495_v47, %v1014_v11  ;;  %v245_v25 = vadd.f32 %v1077_v49, %v235_v4 }
  0xe8   :  { %v511_v62 = vsel %vm250_vm13, %v1032_v27, %v1030_v26  ;;  %v496_v7 = vsel %vm83_vm7, %v494_v40, 0.0 }
  0xe9   :  { %v519_v9 = vmul.f32 %v511_v62, %v1085_v51  ;;  %v498_v3 = vadd.f32 %v496_v7, %v1016_v12  ;;  %v267_v13 = vsel %vm87_vm10, %v265_v50, 0.0  ;;  %v244_v12 = vadd.f32 %v1075_v48, %v234_v44 }
  0xea   :  { %v505_v34 = vadd.f32 %v1087_v59, %v497_v8 }
  0xeb   :  { %v1034_v28 = vpop.permute.xlu1 %515  ;;  %v1036_v18 = vpop.permute.xlu0 %513  ;;  %v269_v22 = vadd.f32 %v267_v13, %v244_v12  ;;  %v506_v47 = vadd.f32 %v1106_v6, %v498_v3 }
  0xec   :  { %v517_v39 = vsel %vm250_vm13, %v1036_v18, %v1034_v28  ;;  %v518_v57 = vsel %vm250_vm13, %v1034_v28, %v1036_v18  ;;  %v512_v28 = vsel %vm250_vm13, %v1030_v26, %v1032_v27 }
  0xed   :  { %v521_v18 = vmul.f32 %v517_v39, %v262_v5  ;;  %v522_v26 = vmul.f32 %v518_v57, %v262_v5 }
  0xef   :  { %v1038_v17 = vpop.permute.xlu1 %273  ;;  %v1040_v29 = vpop.permute.xlu0 %271  ;;  %v523_v19 = vadd.f32 %v521_v18, %v519_v9 }
  0xf0   :  { %v277_v53 = vsel %vm275_vm14, %v1038_v17, %v1040_v29 }
  0xf1   :  { %v286_v15 = vmul.f32 %v1129_v16, %v277_v53  ;;  %v525_v59 = vsel %vm87_vm10, %v523_v19, 0.0 }
  0xf3   :  { %v1044_v32 = vpop.permute.xlu1 %280  ;;  %v1046_v33 = vpop.permute.xlu0 %278 }
  0xf4   :  { %v282_v52 = vsel %vm275_vm14, %v1046_v33, %v1044_v32  ;;  %v283_v58 = vsel %vm275_vm14, %v1044_v32, %v1046_v33  ;;  %v276_v32 = vsel %vm275_vm14, %v1040_v29, %v1038_v17  ;;  %v268_v17 = vsel %vm87_vm10, %v266_v54, 0.0 }
  0xf5   :  { %v288_v11 = vmul.f32 %v1132_v20, %v282_v52  ;;  %v289_v27 = vmul.f32 %v1132_v20, %v283_v58  ;;  %v520_v29 = vmul.f32 %v512_v28, %v1085_v51  ;;  %v285_v5 = vmul.f32 %v1129_v16, %v276_v32 }
  0xf6   :  { %v270_v39 = vadd.f32 %v268_v17, %v245_v25 }
  0xf7   :  { %v1063_v45 = vpop.permute.xlu1 %531  ;;  %v1065_v56 = vpop.permute.xlu0 %529  ;;  %v524_v37 = vadd.f32 %v522_v26, %v520_v29  ;;  %v290_v40 = vadd.f32 %v288_v11, %v285_v5  ;;  %v291_v41 = vadd.f32 %v289_v27, %v286_v15 }
  0xf8   :  { %v534_v6 = vsel %vm275_vm14, %v1063_v45, %v1065_v56 }
  0xfb   :  { %v1099_v60 = vpop.permute.xlu1 %537  ;;  %v1101_v61 = vpop.permute.xlu0 %535 }
  0xfc   :  { %v539_v44 = vsel %vm275_vm14, %v1101_v61, %v1099_v60  ;;  %v540_v50 = vsel %vm275_vm14, %v1099_v60, %v1101_v61  ;;  %v542_v60 = vmul.f32 %v534_v6, %v1129_v16 }
  0xfd   :  { %v543_v7 = vmul.f32 %v539_v44, %v1132_v20  ;;  %v544_v28 = vmul.f32 %v540_v50, %v1132_v20 }
  0xff   :  { %v1134_v30 = vpop.permute.xlu1 %298  ;;  %v1136_v31 = vpop.permute.xlu0 %296 }
 0x100   :  { %v302_v24 = vsel %vm300_vm15, %v1134_v30, %v1136_v31 }
 0x101   :  { %v311_v49 = vmul.f32 %v1146_v38, %v302_v24  ;;  %v546_v24 = vadd.f32 %v544_v28, %v542_v60 }
 0x103   :  { %v306_v46 = vpop.permute.xlu1 %305  ;;  %v304_v55 = vpop.permute.xlu0 %303 }
 0x104   :  { %v308_v2 = vsel %vm300_vm15, %v306_v46, %v304_v55  ;;  %v307_v21 = vsel %vm300_vm15, %v304_v55, %v306_v46  ;;  %v533_v46 = vsel %vm275_vm14, %v1065_v56, %v1063_v45  ;;  %v301_v55 = vsel %vm300_vm15, %v1136_v31, %v1134_v30 }
 0x105   :  { %v314_v35 = vmul.f32 %v1151_v42, %v308_v2  ;;  %v313_v62 = vmul.f32 %v1151_v42, %v307_v21  ;;  %v526_v56 = vsel %vm87_vm10, %v524_v37, 0.0  ;;  %v292_v30 = vsel %vm83_vm7, %v290_v40, 0.0 }
 0x106   :  { %v293_v31 = vsel %vm1234_vm2, %v291_v41, 0.0  ;;  %v541_v58 = vmul.f32 %v533_v46, %v1129_v16  ;;  %v310_v61 = vmul.f32 %v1146_v38, %v301_v55  ;;  %v294_v9 = vadd.f32 %v292_v30, %v269_v22 }
 0x107   :  { %v1202_v33 = vpop.permute.xlu1 %553  ;;  %v1204_v10 = vpop.permute.xlu0 %551  ;;  %v316_v54 = vadd.f32 %v314_v35, %v311_v49  ;;  %v295_v5 = vadd.f32 %v293_v31, %v270_v39  ;;  %v527_v21 = vadd.f32 %v525_v59, %v505_v34  ;;  %v528_v49 = vadd.f32 %v526_v56, %v506_v47 }
 0x108   :  { %v556_v4 = vsel %vm300_vm15, %v1202_v33, %v1204_v10  ;;  %v315_v32 = vadd.f32 %v313_v62, %v310_v61  ;;  %v545_v15 = vadd.f32 %v543_v7, %v541_v58  ;;  %v555_v12 = vsel %vm300_vm15, %v1204_v10, %v1202_v33 }
 0x109   :  { %v318_v16 = vsel %vm92_vm0, %v316_v54, 0.0  ;;  %v564_v27 = vmul.f32 %v556_v4, %v1146_v38  ;;  %v563_v33 = vmul.f32 %v555_v12, %v1146_v38  ;;  %v548_v38 = vsel %vm1234_vm2, %v546_v24, 0.0 }
 0x10a   :  { %v319_v22 = vadd.f32 %v315_v32, %v294_v9  ;;  %v320_v39 = vadd.f32 %v318_v16, %v295_v5  ;;  %v547_v34 = vsel %vm83_vm7, %v545_v15, 0.0  ;;  %v550_v58 = vadd.f32 %v548_v38, %v528_v49  ;;  %v699_v5 = vld [vmem:[#allocation6] sm:$0xff] }
 0x10b   :  { %v560_v36 = vpop.permute.xlu1 %559  ;;  %v558_v51 = vpop.permute.xlu0 %557  ;;  %v549_v14 = vadd.f32 %v547_v34, %v527_v21 }
 0x10c   :  { %v562_v52 = vsel %vm300_vm15, %v560_v36, %v558_v51  ;;  %v561_v20 = vsel %vm300_vm15, %v558_v51, %v560_v36 }
 0x10d   :  { %v566_v53 = vmul.f32 %v562_v52, %v1151_v42  ;;  %v565_v35 = vmul.f32 %v561_v20, %v1151_v42 }
 0x10f   :  { %v324_v57 = vpop.permute.xlu1 %323  ;;  %v322_v45 = vpop.permute.xlu0 %321  ;;  %v568_v36 = vadd.f32 %v566_v53, %v564_v27  ;;  %v567_v47 = vadd.f32 %v565_v35, %v563_v33 }
 0x110   :  { %v326_v18 = vsel %vm325_vm1, %v322_v45, %v324_v57  ;;  %v327_v8 = vsel %vm325_vm1, %v324_v57, %v322_v45 }
 0x111   :  { %v335_v13 = vmul.f32 %v1154_v43, %v326_v18  ;;  %v336_v17 = vmul.f32 %v1154_v43, %v327_v8  ;;  %v570_v59 = vsel %vm92_vm0, %v568_v36, 0.0  ;;  %v571_v4 = vadd.f32 %v567_v47, %v549_v14  ;;  %v700_v36 = vld [vmem:[#allocation6 + $0x8] sm:$0xff] }
 0x112   :  { %v572_v7 = vadd.f32 %v570_v59, %v550_v58 }
 0x113   :  { %v331_v26 = vpop.permute.xlu1 %330  ;;  %v329_v11 = vpop.permute.xlu0 %328 }
 0x114   :  { %v332_v2 = vsel %vm325_vm1, %v329_v11, %v331_v26  ;;  %v333_v3 = vsel %vm325_vm1, %v331_v26, %v329_v11  ;;  %v359_v26 = vshrl.u32 %v55_v0, 7 }
 0x115   :  { %v338_v29 = vmul.f32 %v1164_v63, %v332_v2  ;;  %v339_v19 = vmul.f32 %v1164_v63, %v333_v3 }
 0x116   :  { %v360_v2 = vsub.s32 0, %v359_v26 }
 0x117   :  { %v340_v51 = vadd.f32 %v338_v29, %v335_v13  ;;  %v341_v37 = vadd.f32 %v339_v19, %v336_v17  ;;  %v576_v40 = vpop.permute.xlu1 %575  ;;  %v574_v41 = vpop.permute.xlu0 %573 }
 0x118   :  { %v577_v42 = vsel %vm325_vm1, %v574_v41, %v576_v40  ;;  %v578_v44 = vsel %vm325_vm1, %v576_v40, %v574_v41 }
 0x119   :  { %v342_v10 = vsel %vm87_vm10, %v340_v51, 0.0  ;;  %v343_v46 = vsel %vm1305_vm3, %v341_v37, 0.0  ;;  %v585_v30 = vmul.f32 %v577_v42, %v1154_v43  ;;  %v586_v31 = vmul.f32 %v578_v44, %v1154_v43 }
 0x11a   :  { %v344_v6 = vadd.f32 %v342_v10, %v319_v22  ;;  %v345_v55 = vadd.f32 %v343_v46, %v320_v39 }
 0x11b   :  { %v582_v50 = vpop.permute.xlu1 %581  ;;  %v580_v62 = vpop.permute.xlu0 %579 }
 0x11c   :  { %v664_v54 = vmul.f32 -1.442695, %v344_v6  ;;  %v665_v57 = vmul.f32 -1.442695, %v345_v55  ;;  %v583_v45 = vsel %vm325_vm1, %v580_v62, %v582_v50  ;;  %v584_v56 = vsel %vm325_vm1, %v582_v50, %v580_v62 }
 0x11d   :  { %v587_v48 = vmul.f32 %v583_v45, %v1164_v63  ;;  %v588_v52 = vmul.f32 %v584_v56, %v1164_v63 }
 0x11e   :  { %683 = vpow2.f32 %v664_v54 }
 0x11f   :  { %685 = vpow2.f32 %v665_v57  ;;  %v589_v60 = vadd.f32 %v587_v48, %v585_v30  ;;  %v590_v61 = vadd.f32 %v588_v52, %v586_v31 }
 0x121   :  { %v591_v1 = vsel %vm87_vm10, %v589_v60, 0.0  ;;  %v592_v28 = vsel %vm1305_vm3, %v590_v61, 0.0 }
 0x122   :  { %v593_v18 = vadd.f32 %v591_v1, %v571_v4  ;;  %v594_v43 = vadd.f32 %v592_v28, %v572_v7 }
 0x124   :  { %v666_v8 = vmul.f32 -1.442695, %v593_v18  ;;  %v667_v9 = vmul.f32 -1.442695, %v594_v43 }
 0x126   :  { %687 = vpow2.f32 %v666_v8 }
 0x127   :  { %689 = vpow2.f32 %v667_v9 }
 0x128   :  { %v684_v63 = vpop.eup %683 }
 0x129   :  { %v686_v32 = vpop.eup %685  ;;  %v352_v16 = vadd.f32 1.0, %v684_v63 }
 0x12a   :  { %v353_v53 = vadd.f32 1.0, %v686_v32 }
 0x12b   :  { %691 = vrcp.f32 %v352_v16 }
 0x12c   :  { %693 = vrcp.f32 %v353_v53 }
 0x130   :  { %v688_v11 = vpop.eup %687 }
 0x131   :  { %v690_v23 = vpop.eup %689  ;;  %v601_v27 = vadd.f32 1.0, %v688_v11 }
 0x132   :  { %v602_v20 = vadd.f32 1.0, %v690_v23 }
 0x133   :  { %695 = vrcp.f32 %v601_v27 }
 0x134   :  { %697 = vrcp.f32 %v602_v20 }
 0x135   :  { %v692_v3 = vpop.eup %691 }
 0x136   :  { %v694_v13 = vpop.eup %693  ;;  %v361_v17 = vrot.slane %v692_v3, %v360_v2 }
 0x137   :  { %v365_v29 = vrot.slane %v694_v13, %v360_v2 }
 0x139   :  { %v368_v19 = vcombine.low %v361_v17, %v365_v29 }
 0x13b   :  { %v370_v15 = vmul.f32 %v699_v5, %v368_v19 }
 0x13d   :  { %v696_v24 = vpop.eup %695  ;;  %371 = vst [vmem:[#allocation7] sm:$0xff] %v370_v15 }
 0x13e   :  { %v698_v12 = vpop.eup %697  ;;  %v610_v25 = vrot.slane %v696_v24, %v360_v2 }
 0x13f   :  { %v614_v35 = vrot.slane %v698_v12, %v360_v2 }
 0x141   :  { %v617_v0 = vcombine.low %v610_v25, %v614_v35 }
 0x143   :  { %v619_v51 = vmul.f32 %v700_v36, %v617_v0 }
 0x145   :  { %621 = vst [vmem:[#allocation7 + $0x8] sm:$0xff] %v619_v51 }
 0x146   :  { %744 = shalt.err (!%p741_p1)
}
 0x147   :  { %s745_s6 = scalar_lea.hbm %s1355_s2, 256 }
 0x148   :  { %p746_p2 = scmp.ne.s32.totalorder %s1355_s2, %s745_s6  ;;  %p749_p3 = scmp.lt.u32.totalorder %s745_s6, %s1355_s2 }
 0x14a   :  { %p751_p4 = pnand %p749_p3, %p746_p2 }
 0x14c   :  { %754 = shalt.err (!%p751_p4)
}
 0x14d   :  { %633 = dma.vmem_to_hbm [thread:$0]  %s628_s3, 256, %s1355_s2, [#allocation4], %s763_s0, %s763_s0, %s764_s29  }
 0x14e   :  { %759 = dma.done.wait [#allocation4], 256  }
 0x14f   :  { %760 = vsyncadd [#allocation4], 4294967040 }
 0x150   :  { %637 = vsyncpa [#allocation3], 1 }
 0x151   :  { %638 = vsyncpa [#allocation4], 1 }
 0x152   :  { %639 = vsyncpa [#allocation5], 1 }

</bundles_post_ra>
